<compile_context>
chip_gen: v7x
topology: tpu7x:2x2x1
jax: 0.10.0
libtpu: 0.0.40
codegen_flags: <defaults>
</compile_context>

<pallas_src>
import functools
import math

import jax
import jax.numpy as jnp
from jax.experimental import pallas as pl
from jax.experimental.pallas import tpu as pltpu


def _mha_kernel(x_ref, bias_ref, wq_ref, wk_ref, wv_ref, wc_ref,
                out_ref, attn_ref, acc_ref, *, inv_sqrt_dk, compute_dtype):
    h = pl.program_id(1)

    @pl.when(h == 0)
    def _():
        acc_ref[...] = jnp.zeros_like(acc_ref)

    bt, seq, d_model = x_ref.shape
    # Fold the batch tile into the matmul M dimension for the projections.
    x2d = x_ref[...].reshape(bt * seq, d_model).astype(compute_dtype)

    wq = wq_ref[0].astype(compute_dtype)     # (d_model, h_dim) contraction-major
    wk = wk_ref[0].astype(compute_dtype)
    wv = wv_ref[0].astype(compute_dtype)

    q = jnp.dot(x2d, wq, preferred_element_type=jnp.float32).reshape(bt, seq, -1)
    k = jnp.dot(x2d, wk, preferred_element_type=jnp.float32).reshape(bt, seq, -1)
    v = jnp.dot(x2d, wv, preferred_element_type=jnp.float32).reshape(bt, seq, -1)

    # Scaled scores + additive mask bias (bias is (bt, 1, seq) -> broadcast over q rows).
    s = jnp.einsum('bqd,bkd->bqk',
                   q.astype(compute_dtype), k.astype(compute_dtype),
                   preferred_element_type=jnp.float32) * inv_sqrt_dk
    s = s + bias_ref[...]

    # Numerically stable softmax over keys; reciprocal goes to the EUP slot.
    m = jnp.max(s, axis=-1, keepdims=True)
    e = jnp.exp(s - m)
    p = e * pl.reciprocal(jnp.sum(e, axis=-1, keepdims=True), approx=True)

    attn_ref[...] = p.reshape(attn_ref.shape)          # (bt, 1, seq, seq)

    z = jnp.einsum('bqk,bkd->bqd',
                   p.astype(compute_dtype), v.astype(compute_dtype),
                   preferred_element_type=jnp.float32)  # (bt, seq, h_dim)

    # Fold this head's contribution straight into the combiner output accumulator.
    wc = wc_ref[0].astype(compute_dtype)                # (h_dim, d_model)
    z2d = z.reshape(bt * seq, -1).astype(compute_dtype)
    acc_ref[...] += jnp.dot(z2d, wc,
                            preferred_element_type=jnp.float32).reshape(bt, seq, d_model)

    @pl.when(h == pl.num_programs(1) - 1)
    def _():
        out_ref[...] = jnp.maximum(acc_ref[...], 0.0).astype(out_ref.dtype)


def multi_head_attention(x, mask, wqkv, wc, nhead, *,
                         compute_dtype=jnp.float32, block_b=None):
    """Eval-mode forward: returns (relu(out), attn.transpose(0,1).squeeze())."""
    b, seq, d_model = x.shape
    d_hid = wqkv.shape[0] // 3
    h_dim = d_model // nhead
    # The torch reshape (b, seq, nhead, 3*h_dim) requires d_hid == nhead * h_dim == d_model.
    assert d_hid == nhead * h_dim

    if block_b is None:
        block_b = b
    assert b % block_b == 0

    # Per-head weights, already transposed to contraction-major layout so the
    # kernel does plain MXU matmuls with no in-kernel transpose.
    w_r = wqkv.reshape(nhead, 3, h_dim, d_model)
    wq_h = jnp.transpose(w_r[:, 0], (0, 2, 1))      # (nhead, d_model, h_dim)
    wk_h = jnp.transpose(w_r[:, 1], (0, 2, 1))
    wv_h = jnp.transpose(w_r[:, 2], (0, 2, 1))
    wc_h = wc.T.reshape(nhead, h_dim, d_model)      # (nhead, h_dim, d_model)

    # Mask folded once into an additive bias (torch masked_fill value -9e15).
    if mask is None:
        bias = jnp.zeros((b, 1, seq), jnp.float32)
    else:
        bias = jnp.where(mask.reshape(b, 1, seq) == 0,
                         jnp.float32(-9e15), jnp.float32(0.0))

    kernel = functools.partial(_mha_kernel,
                               inv_sqrt_dk=1.0 / math.sqrt(h_dim),
                               compute_dtype=compute_dtype)

    out, attn = pl.pallas_call(
        kernel,
        out_shape=(
            jax.ShapeDtypeStruct((b, seq, d_model), jnp.float32),
            jax.ShapeDtypeStruct((b, nhead, seq, seq), jnp.float32),
        ),
        grid=(b // block_b, nhead),                  # head axis = reduction, last
        in_specs=[
            pl.BlockSpec((block_b, seq, d_model), lambda i, h: (i, 0, 0)),   # x
            pl.BlockSpec((block_b, 1, seq), lambda i, h: (i, 0, 0)),         # mask bias
            pl.BlockSpec((1, d_model, h_dim), lambda i, h: (h, 0, 0)),       # Wq (per head)
            pl.BlockSpec((1, d_model, h_dim), lambda i, h: (h, 0, 0)),       # Wk
            pl.BlockSpec((1, d_model, h_dim), lambda i, h: (h, 0, 0)),       # Wv
            pl.BlockSpec((1, h_dim, d_model), lambda i, h: (h, 0, 0)),       # Wc (per head)
        ],
        out_specs=(
            pl.BlockSpec((block_b, seq, d_model), lambda i, h: (i, 0, 0)),   # resident over h
            pl.BlockSpec((block_b, 1, seq, seq), lambda i, h: (i, h, 0, 0)),
        ),
        scratch_shapes=[pltpu.VMEM((block_b, seq, d_model), jnp.float32)],
        compiler_params=pltpu.CompilerParams(
            dimension_semantics=("parallel", "arbitrary")),
    )(x, bias, wq_h, wk_h, wv_h, wc_h)

    # eval-mode return: attnt.transpose(0, 1).squeeze()
    return out, jnp.squeeze(jnp.swapaxes(attn, 0, 1))


def _reference(x, mask, wqkv, wc, nhead):
    """Pure-JAX fp32 transcription of the torch forward (eval mode) for validation."""
    b, seq, d_model = x.shape
    d_hid = wqkv.shape[0] // 3
    h_dim = d_model // nhead
    qkv = x @ wqkv.T
    qkv = qkv.reshape(b, seq, nhead, 3 * h_dim).transpose(0, 2, 1, 3)
    q, k, v = jnp.split(qkv, 3, axis=-1)
    s = jnp.einsum('bhqd,bhkd->bhqk', q, k) / (float(h_dim) ** 0.5)
    s = jnp.where((mask == 0)[:, None, None, :], jnp.float32(-9e15), s)
    p = jax.nn.softmax(s, axis=-1)
    z = jnp.einsum('bhqk,bhkd->bhqd', p, v)
    vals = z.transpose(0, 2, 1, 3).reshape(b, seq, d_hid)
    out = jnp.maximum(vals @ wc.T, 0.0)
    return out, jnp.squeeze(jnp.swapaxes(p, 0, 1))


if __name__ == "__main__":
    # Small shapes consistent with the module: d_model must equal d_hid for the
    # torch reshape to be valid; d_model % nhead == 0.
    B, SEQ, D_MODEL, NHEAD = 2, 8, 32, 4
    D_HID = D_MODEL

    key = jax.random.PRNGKey(0)
    kx, kq, kc = jax.random.split(key, 3)

    x = jax.random.normal(kx, (B, SEQ, D_MODEL), dtype=jnp.float32)
    # mask: (B, SEQ), 1 = keep, 0 = masked-out key positions (variable lengths)
    lengths = jnp.array([SEQ, SEQ - 2])
    mask = (jnp.arange(SEQ)[None, :] < lengths[:, None]).astype(jnp.float32)

    # Deterministic xavier_normal_ init with gain = sqrt(2/5), torch weight layout.
    gain = (2.0 / 5.0) ** 0.5
    std_qkv = gain * math.sqrt(2.0 / (D_MODEL + 3 * D_HID))
    std_c = gain * math.sqrt(2.0 / (D_HID + D_MODEL))
    wqkv = std_qkv * jax.random.normal(kq, (3 * D_HID, D_MODEL), dtype=jnp.float32)
    wc = std_c * jax.random.normal(kc, (D_MODEL, D_HID), dtype=jnp.float32)

    ref_out, ref_attn = _reference(x, mask, wqkv, wc, NHEAD)

    # 1) fp32 compute path (module semantics; only the softmax reciprocal is approximate).
    out, attn = multi_head_attention(x, mask, wqkv, wc, NHEAD,
                                     compute_dtype=jnp.float32)
    out, attn = jax.block_until_ready(out), jax.block_until_ready(attn)
    assert jnp.allclose(out, ref_out, atol=2e-3, rtol=2e-3)
    assert jnp.allclose(attn, ref_attn, atol=2e-3, rtol=2e-3)

    # 2) bf16 MXU-input path (v6e/v7x fast path; fp32 accumulation throughout).
    out16, attn16 = multi_head_attention(x, mask, wqkv, wc, NHEAD,
                                         compute_dtype=jnp.bfloat16)
    out16, attn16 = jax.block_until_ready(out16), jax.block_until_ready(attn16)
    assert jnp.allclose(out16, ref_out, atol=5e-2, rtol=5e-2)
    assert jnp.allclose(attn16, ref_attn, atol=5e-2, rtol=5e-2)

    print("KERNEL_OK")
</pallas_src>

<mosaic_0001>
module attributes {stable_mosaic.version = 11 : i64} {
  func.func @_mha_kernel(%arg0: i32, %arg1: i32, %arg2: memref<2x8x32xf32, #tpu.memory_space<vmem>>, %arg3: memref<2x1x8xf32, #tpu.memory_space<vmem>>, %arg4: memref<1x32x8xf32, #tpu.memory_space<vmem>>, %arg5: memref<1x32x8xf32, #tpu.memory_space<vmem>>, %arg6: memref<1x32x8xf32, #tpu.memory_space<vmem>>, %arg7: memref<1x8x32xf32, #tpu.memory_space<vmem>>, %arg8: memref<2x8x32xf32, #tpu.memory_space<vmem>>, %arg9: memref<2x1x8x8xf32, #tpu.memory_space<vmem>>, %arg10: memref<2x8x32xf32, #tpu.memory_space<vmem>>) attributes {dimension_semantics = [#tpu.dimension_semantics<parallel>, #tpu.dimension_semantics<arbitrary>], iteration_bounds = array<i64: 1, 4>, scalar_prefetch = 0 : i64, scratch_operands = 1 : i64, tpu.core_type = #tpu.core_type<tc>, window_params = [{transform_indices = @transform_0, window_bounds = array<i64: 2, 8, 32>}, {transform_indices = @transform_1, window_bounds = array<i64: 2, 1, 8>}, {transform_indices = @transform_2, window_bounds = array<i64: 1, 32, 8>}, {transform_indices = @transform_3, window_bounds = array<i64: 1, 32, 8>}, {transform_indices = @transform_4, window_bounds = array<i64: 1, 32, 8>}, {transform_indices = @transform_5, window_bounds = array<i64: 1, 8, 32>}, {transform_indices = @transform_6, window_bounds = array<i64: 2, 8, 32>}, {transform_indices = @transform_7, window_bounds = array<i64: 2, 1, 8, 8>}]} {
    %c0_i32 = arith.constant 0 : i32
    %0 = arith.cmpi eq, %arg1, %c0_i32 : i32
    %1 = arith.extui %0 : i1 to i32
    %c0_i32_0 = arith.constant 0 : i32
    %2 = arith.cmpi ne, %1, %c0_i32_0 : i32
    scf.if %2 {
      %cst_37 = arith.constant 0.000000e+00 : f32
      %47 = vector.broadcast %cst_37 : f32 to vector<2x8x32xf32>
      %c0_38 = arith.constant 0 : index
      %c0_39 = arith.constant 0 : index
      %c0_40 = arith.constant 0 : index
      %48 = vector.load %arg10[%c0_38, %c0_39, %c0_40] : memref<2x8x32xf32, #tpu.memory_space<vmem>>, vector<2x8x32xf32>
      tpu.vector_store %arg10[%c0_38, %c0_39, %c0_40], %47 {strides = array<i32>} : memref<2x8x32xf32, #tpu.memory_space<vmem>>, vector<2x8x32xf32>,
    } else {
    }
    %c0 = arith.constant 0 : index
    %c0_1 = arith.constant 0 : index
    %c0_2 = arith.constant 0 : index
    %3 = vector.load %arg2[%c0, %c0_1, %c0_2] : memref<2x8x32xf32, #tpu.memory_space<vmem>>, vector<2x8x32xf32>
    %4 = vector.shape_cast %3 : vector<2x8x32xf32> to vector<16x32xf32>
    %c0_3 = arith.constant 0 : index
    %c0_4 = arith.constant 0 : index
    %c0_5 = arith.constant 0 : index
    %5 = vector.load %arg4[%c0_3, %c0_4, %c0_5] : memref<1x32x8xf32, #tpu.memory_space<vmem>>, vector<1x32x8xf32>
    %6 = vector.shape_cast %5 : vector<1x32x8xf32> to vector<32x8xf32>
    %c0_6 = arith.constant 0 : index
    %c0_7 = arith.constant 0 : index
    %c0_8 = arith.constant 0 : index
    %7 = vector.load %arg5[%c0_6, %c0_7, %c0_8] : memref<1x32x8xf32, #tpu.memory_space<vmem>>, vector<1x32x8xf32>
    %8 = vector.shape_cast %7 : vector<1x32x8xf32> to vector<32x8xf32>
    %c0_9 = arith.constant 0 : index
    %c0_10 = arith.constant 0 : index
    %c0_11 = arith.constant 0 : index
    %9 = vector.load %arg6[%c0_9, %c0_10, %c0_11] : memref<1x32x8xf32, #tpu.memory_space<vmem>>, vector<1x32x8xf32>
    %10 = vector.shape_cast %9 : vector<1x32x8xf32> to vector<32x8xf32>
    %cst = arith.constant dense<0.000000e+00> : vector<16x8xf32>
    %11 = tpu.matmul %4, %6, %cst {dimension_numbers = #tpu.dot_dimension_numbers<[1], [0], [0], [1], [0, 0, 1, 1], [], []>} : vector<16x32xf32>, vector<32x8xf32>, vector<16x8xf32> -> vector<16x8xf32>
    %12 = vector.shape_cast %11 : vector<16x8xf32> to vector<2x8x8xf32>
    %cst_12 = arith.constant dense<0.000000e+00> : vector<16x8xf32>
    %13 = tpu.matmul %4, %8, %cst_12 {dimension_numbers = #tpu.dot_dimension_numbers<[1], [0], [0], [1], [0, 0, 1, 1], [], []>} : vector<16x32xf32>, vector<32x8xf32>, vector<16x8xf32> -> vector<16x8xf32>
    %14 = vector.shape_cast %13 : vector<16x8xf32> to vector<2x8x8xf32>
    %cst_13 = arith.constant dense<0.000000e+00> : vector<16x8xf32>
    %15 = tpu.matmul %4, %10, %cst_13 {dimension_numbers = #tpu.dot_dimension_numbers<[1], [0], [0], [1], [0, 0, 1, 1], [], []>} : vector<16x32xf32>, vector<32x8xf32>, vector<16x8xf32> -> vector<16x8xf32>
    %16 = vector.shape_cast %15 : vector<16x8xf32> to vector<2x8x8xf32>
    "tpu.trace_start"() <{level = 10 : i32, message = "bqd,bkd->bqk"}> : () -> ()
    %cst_14 = arith.constant dense<0.000000e+00> : vector<2x8x8xf32>
    %17 = tpu.matmul %12, %14, %cst_14 {dimension_numbers = #tpu.dot_dimension_numbers<[2], [2], [1], [1], [0, 0, 0, 1, 1, 1], [0], [0]>} : vector<2x8x8xf32>, vector<2x8x8xf32>, vector<2x8x8xf32> -> vector<2x8x8xf32>
    "tpu.trace_stop"() : () -> ()
    %cst_15 = arith.constant 0.353553385 : f32
    %18 = vector.broadcast %cst_15 : f32 to vector<2x8x8xf32>
    %19 = arith.mulf %17, %18 : vector<2x8x8xf32>
    %c0_16 = arith.constant 0 : index
    %c0_17 = arith.constant 0 : index
    %c0_18 = arith.constant 0 : index
    %20 = vector.load %arg3[%c0_16, %c0_17, %c0_18] : memref<2x1x8xf32, #tpu.memory_space<vmem>>, vector<2x1x8xf32>
    %21 = vector.broadcast %20 : vector<2x1x8xf32> to vector<2x8x8xf32>
    %22 = arith.addf %19, %21 : vector<2x8x8xf32>
    %cst_19 = arith.constant dense<0xFF800000> : vector<2x8xf32>
    %23 = vector.multi_reduction <maximumf>, %22, %cst_19 [2] : vector<2x8x8xf32> to vector<2x8xf32>
    %24 = vector.shape_cast %23 : vector<2x8xf32> to vector<2x8x1xf32>
    %25 = vector.broadcast %24 : vector<2x8x1xf32> to vector<2x8x8xf32>
    %26 = arith.subf %22, %25 : vector<2x8x8xf32>
    %27 = math.exp %26 : vector<2x8x8xf32>
    %cst_20 = arith.constant dense<0.000000e+00> : vector<2x8xf32>
    %28 = vector.multi_reduction <add>, %27, %cst_20 [2] : vector<2x8x8xf32> to vector<2x8xf32>
    %29 = vector.shape_cast %28 : vector<2x8xf32> to vector<2x8x1xf32>
    %30 = tpu.reciprocal %29 {approx = true} : vector<2x8x1xf32> -> vector<2x8x1xf32>
    %31 = vector.broadcast %30 : vector<2x8x1xf32> to vector<2x8x8xf32>
    %32 = arith.mulf %27, %31 : vector<2x8x8xf32>
    %33 = vector.shape_cast %32 : vector<2x8x8xf32> to vector<2x1x8x8xf32>
    %c0_21 = arith.constant 0 : index
    %c0_22 = arith.constant 0 : index
    %c0_23 = arith.constant 0 : index
    %c0_24 = arith.constant 0 : index
    %34 = vector.load %arg9[%c0_21, %c0_22, %c0_23, %c0_24] : memref<2x1x8x8xf32, #tpu.memory_space<vmem>>, vector<2x1x8x8xf32>
    tpu.vector_store %arg9[%c0_21, %c0_22, %c0_23, %c0_24], %33 {strides = array<i32>} : memref<2x1x8x8xf32, #tpu.memory_space<vmem>>, vector<2x1x8x8xf32>,
    "tpu.trace_start"() <{level = 10 : i32, message = "bqk,bkd->bqd"}> : () -> ()
    %cst_25 = arith.constant dense<0.000000e+00> : vector<2x8x8xf32>
    %35 = tpu.matmul %32, %16, %cst_25 {dimension_numbers = #tpu.dot_dimension_numbers<[2], [1], [1], [2], [0, 0, 0, 1, 1, 2], [0], [0]>} : vector<2x8x8xf32>, vector<2x8x8xf32>, vector<2x8x8xf32> -> vector<2x8x8xf32>
    "tpu.trace_stop"() : () -> ()
    %c0_26 = arith.constant 0 : index
    %c0_27 = arith.constant 0 : index
    %c0_28 = arith.constant 0 : index
    %36 = vector.load %arg7[%c0_26, %c0_27, %c0_28] : memref<1x8x32xf32, #tpu.memory_space<vmem>>, vector<1x8x32xf32>
    %37 = vector.shape_cast %36 : vector<1x8x32xf32> to vector<8x32xf32>
    %38 = vector.shape_cast %35 : vector<2x8x8xf32> to vector<16x8xf32>
    %c0_29 = arith.constant 0 : index
    %c0_30 = arith.constant 0 : index
    %c0_31 = arith.constant 0 : index
    %39 = vector.load %arg10[%c0_29, %c0_30, %c0_31] : memref<2x8x32xf32, #tpu.memory_space<vmem>>, vector<2x8x32xf32>
    %cst_32 = arith.constant dense<0.000000e+00> : vector<16x32xf32>
    %40 = tpu.matmul %38, %37, %cst_32 {dimension_numbers = #tpu.dot_dimension_numbers<[1], [0], [0], [1], [0, 0, 1, 1], [], []>} : vector<16x8xf32>, vector<8x32xf32>, vector<16x32xf32> -> vector<16x32xf32>
    %41 = vector.shape_cast %40 : vector<16x32xf32> to vector<2x8x32xf32>
    %42 = arith.addf %39, %41 : vector<2x8x32xf32>
    %c0_33 = arith.constant 0 : index
    %c0_34 = arith.constant 0 : index
    %c0_35 = arith.constant 0 : index
    %43 = vector.load %arg10[%c0_33, %c0_34, %c0_35] : memref<2x8x32xf32, #tpu.memory_space<vmem>>, vector<2x8x32xf32>
    tpu.vector_store %arg10[%c0_33, %c0_34, %c0_35], %42 {strides = array<i32>} : memref<2x8x32xf32, #tpu.memory_space<vmem>>, vector<2x8x32xf32>,
    %c3_i32 = arith.constant 3 : i32
    %44 = arith.cmpi eq, %arg1, %c3_i32 : i32
    %45 = arith.extui %44 : i1 to i32
    %c0_i32_36 = arith.constant 0 : i32
    %46 = arith.cmpi ne, %45, %c0_i32_36 : i32
    scf.if %46 {
      %c0_37 = arith.constant 0 : index
      %c0_38 = arith.constant 0 : index
      %c0_39 = arith.constant 0 : index
      %47 = vector.load %arg10[%c0_37, %c0_38, %c0_39] : memref<2x8x32xf32, #tpu.memory_space<vmem>>, vector<2x8x32xf32>
      %cst_40 = arith.constant 0.000000e+00 : f32
      %48 = vector.broadcast %cst_40 : f32 to vector<2x8x32xf32>
      %49 = arith.maximumf %47, %48 : vector<2x8x32xf32>
      %c0_41 = arith.constant 0 : index
      %c0_42 = arith.constant 0 : index
      %c0_43 = arith.constant 0 : index
      %50 = vector.load %arg8[%c0_41, %c0_42, %c0_43] : memref<2x8x32xf32, #tpu.memory_space<vmem>>, vector<2x8x32xf32>
      tpu.vector_store %arg8[%c0_41, %c0_42, %c0_43], %49 {strides = array<i32>} : memref<2x8x32xf32, #tpu.memory_space<vmem>>, vector<2x8x32xf32>,
    } else {
    }
    return
  }
  func.func @transform_0(%arg0: i32, %arg1: i32) -> (i32, i32, i32) {
    %c0_i32 = arith.constant 0 : i32
    %c0_i32_0 = arith.constant 0 : i32
    %c0_i32_1 = arith.constant 0 : i32
    return %arg0, %c0_i32, %c0_i32_0 : i32, i32, i32
  }
  func.func @transform_1(%arg0: i32, %arg1: i32) -> (i32, i32, i32) {
    %c0_i32 = arith.constant 0 : i32
    %c0_i32_0 = arith.constant 0 : i32
    %c0_i32_1 = arith.constant 0 : i32
    return %arg0, %c0_i32, %c0_i32_0 : i32, i32, i32
  }
  func.func @transform_2(%arg0: i32, %arg1: i32) -> (i32, i32, i32) {
    %c0_i32 = arith.constant 0 : i32
    %c0_i32_0 = arith.constant 0 : i32
    %c0_i32_1 = arith.constant 0 : i32
    return %arg1, %c0_i32, %c0_i32_0 : i32, i32, i32
  }
  func.func @transform_3(%arg0: i32, %arg1: i32) -> (i32, i32, i32) {
    %c0_i32 = arith.constant 0 : i32
    %c0_i32_0 = arith.constant 0 : i32
    %c0_i32_1 = arith.constant 0 : i32
    return %arg1, %c0_i32, %c0_i32_0 : i32, i32, i32
  }
  func.func @transform_4(%arg0: i32, %arg1: i32) -> (i32, i32, i32) {
    %c0_i32 = arith.constant 0 : i32
    %c0_i32_0 = arith.constant 0 : i32
    %c0_i32_1 = arith.constant 0 : i32
    return %arg1, %c0_i32, %c0_i32_0 : i32, i32, i32
  }
  func.func @transform_5(%arg0: i32, %arg1: i32) -> (i32, i32, i32) {
    %c0_i32 = arith.constant 0 : i32
    %c0_i32_0 = arith.constant 0 : i32
    %c0_i32_1 = arith.constant 0 : i32
    return %arg1, %c0_i32, %c0_i32_0 : i32, i32, i32
  }
  func.func @transform_6(%arg0: i32, %arg1: i32) -> (i32, i32, i32) {
    %c0_i32 = arith.constant 0 : i32
    %c0_i32_0 = arith.constant 0 : i32
    %c0_i32_1 = arith.constant 0 : i32
    return %arg0, %c0_i32, %c0_i32_0 : i32, i32, i32
  }
  func.func @transform_7(%arg0: i32, %arg1: i32) -> (i32, i32, i32, i32) {
    %c0_i32 = arith.constant 0 : i32
    %c0_i32_0 = arith.constant 0 : i32
    %c0_i32_1 = arith.constant 0 : i32
    return %arg0, %arg1, %c0_i32, %c0_i32_0 : i32, i32, i32, i32
  }
}

</mosaic_0001>

<bundles_post_ra>
// kernel: tpu_custom_call.1
= control target key start
LH: loop header
LB: loop body
LE: loop exit
PB: predicated region body
PF: predicated region fallthrough
CT: control target
= control target key end

     0   :  { %13 = vsyncpa [#allocation4], 0  ;;  %s1873_s0 = inlined_call_operand.vmem [shape: f32[2,8,32], index: 0, kind: input, shape index: {}]   ;;  %s1874_s1 = inlined_call_operand.vmem [shape: f32[2,1,8], index: 1, kind: input, shape index: {}]   ;;  %s1875_s2 = inlined_call_operand.vmem [shape: f32[4,32,8], index: 2, kind: input, shape index: {}]   ;;  %s1876_s3 = inlined_call_operand.vmem [shape: f32[4,32,8], index: 3, kind: input, shape index: {}]   ;;  %s1877_s4 = inlined_call_operand.vmem [shape: f32[4,32,8], index: 4, kind: input, shape index: {}]   ;;  %s1878_s5 = inlined_call_operand.vmem [shape: f32[4,8,32], index: 5, kind: input, shape index: {}]   ;;  %s1879_s6 = inlined_call_operand.hbm [shape: f32[2,8,32], index: 6, kind: output, shape index: {0}]   ;;  %s1880_s7 = inlined_call_operand.hbm [shape: f32[2,4,8,8], index: 7, kind: output, shape index: {1}]  }
   0x1   :  { %14 = vsyncpa [#allocation6], 0 }
   0x2   :  { %16 = vsyncpa [#allocation6 + $0x1], 0  ;;  %s1656_s24 = smov 0   ;;  %s1658_s25 = smov 0  }
   0x3   :  { %s1660_s26 = smov 0   ;;  %s1662_s27 = smov 0  }
   0x4   :  { %s1664_s28 = smov 0   ;;  %s1666_s29 = smov 0  }
   0x5 LB: > { %1886 = sst [smem:[#allocation9_spill]] %s1594_s26  ;;  %s1269_s30 = sadd.s32 4294967295, %s1606_s29   ;;  %s1606_s29 = sphi %s1666_s29, %s22_s29   ;;  %s1602_s28 = sphi %s1664_s28, %s1899_s28   ;;  %s1598_s27 = sphi %s1662_s27, %s1898_s27   ;;  %s1594_s26 = sphi %s1660_s26, %s1897_s26   ;;  %s1590_s25 = sphi %s1658_s25, %s1901_s25   ;;  %s1586_s24 = sphi %s1656_s24, %s1900_s24  }
   0x6   : > { %1887 = sst [smem:[#allocation10_spill]] %s1602_s28  ;;  %s1270_s8 = sadd.s32 4294967294, %s1606_s29  }
   0x7   : > { %s31_s9 = sadd.s32 1, %s1602_s28  ;;  %s225_s10 = sadd.s32 1, %s1594_s26 }
   0x8   : > { %p32_p0 = scmp.ge.s32.totalorder %s31_s9, 4  ;;  %p235_p1 = scmp.ne.s32.totalorder %s1594_s26, %s1590_s25 }
   0x9   : > { %p1692_p2 = scmp.eq.s32.totalorder %s1269_s30, 3  ;;  %p241_p3 = scmp.ne.s32.totalorder %s1590_s25, %s1586_s24 }
   0xa   : > { %s1903_s9 = smov (%p32_p0, %s31_s9), 0  ;;  %p242_p5 = scmp.eq.s32.totalorder %s1270_s8, 3 }
   0xb   : > { %1889 = sst [smem:[#allocation11_spill]] %s1903_s9  ;;  %p1702_p4 = por %p1692_p2, %p235_p1 }
   0xc   : > { %s221_s13 = ssub.s32 %s1602_s28, %s1903_s9  ;;  %p1275_p6 = scmp.ge.s32.totalorder %s1606_s29, 1 }
   0xd   : > { %p223_p7 = scmp.eq.s32.totalorder %s221_s13, 0  ;;  %p1709_p8 = por %p242_p5, %p241_p3 }
   0xe   : > { %p308_p9 = scmp.lt.s32.totalorder %s1606_s29, 5 }
   0xf   : > { %s1891_s14 = scalar_select %p1709_p8, 1, 0 }
  0x10   : > { %s1715_s15 = scalar_select %p223_p7, %s1594_s26, %s225_s10  }
  0x11   : > { %1892 = sst [smem:[#allocation12_spill]] %s1891_s14  ;;  %p309_p10 = pnand %p1275_p6, %p308_p9 }
  0x12   : > { %1893 = sst [smem:[#allocation13_spill]] %s1715_s15  ;;  %s1884_s16 = sand.u32 (!%p309_p10), 1, %s1590_s25  }
  0x13   : > { %312 = sbr.rel (%p309_p10) target bundleno = 1285 (0x505), region = 44  ;;  %p374_p11 = scmp.lt.s32.totalorder (!%p309_p10), %s1598_s27, 3 }
  0x14   : > { %s1276_s17 = sshll.u32 (!%p309_p10), %s1884_s16, 4  ;;  %p1284_p12 = scmp.ne.s32.totalorder (!%p309_p10), %s1598_s27, 0 }
  0x15   : > { %s1738_s14 = scalar_lea.vmem (!%p309_p10), [#allocation5], %s1276_s17 }
  0x1a   : > { %s375_s18 = scalar_select %p374_p11, %s1598_s27, 3 }
  0x1b   : > { %398 = sbr.rel (%p1284_p12) target bundleno = 34 (0x22), region = 48  ;;  %vm399_vm0 = vcmask (!%p1284_p12), 261120   ;;  %v1608_v0 = vmov (!%p1284_p12), 0.0  }
  0x1c   : > { %s1308_s19 = sshll.u32 %s375_s18, 5  ;;  %s1283_s20 = sshll.u32 %s375_s18, 3  ;;  %400 = vst.msk [vmem:[#allocation2] sm:$0xff] (!%p1284_p12), %vm399_vm0, %v1608_v0  ;;  %401 = vst.msk [vmem:[#allocation2 + $0x8] sm:$0xff] (!%p1284_p12), %vm399_vm0, %v1608_v0 }
  0x1d   : > { %s378_s23 = scalar_lea.vmem %s1875_s2, %s1308_s19  ;;  %s383_s10 = scalar_lea.vmem %s1876_s3, %s1308_s19 }
  0x1e   : > { %s1731_s28 = scalar_lea.vmem %s1877_s4, %s1308_s19  ;;  %s1736_s16 = scalar_lea.vmem %s1878_s5, %s1283_s20 }
  0x22 PF: > { %v408_v1 = vld [vmem:[%s383_s10] sm:$0xff]  ;;  %v409_v2 = vld [vmem:[%s383_s10 + $0x8] sm:$0xff]  ;;  %vm416_vm1 = vcmask 261120   ;;  %v410_v6 = vld [vmem:[%s383_s10 + $0x10] sm:$0xff]  ;;  %v1609_v15 = vmov 0.0   ;;  %vm1610_vm2 = vmmov 0  }
  0x23   : > { %v404_v3 = vld [vmem:[%s378_s23] sm:$0xff]  ;;  %v1406_v4 = vpack.c.bf16 %v409_v2, %v408_v1  ;;  %v405_v5 = vld [vmem:[%s378_s23 + $0x8] sm:$0xff]  ;;  %v411_v7 = vld [vmem:[%s383_s10 + $0x18] sm:$0xff]  ;;  %vm648_vm3 = vcmask 64512   ;;  %p1301_p13 = scmp.ne.s32.totalorder %s1598_s27, 3 }
  0x24   : > { %v1398_v8 = vpack.c.bf16 %v405_v5, %v404_v3  ;;  %v1410_v9 = vpack.c.bf16 %v411_v7, %v410_v6  ;;  %v406_v10 = vld [vmem:[%s378_s23 + $0x10] sm:$0xff]  ;;  %v407_v11 = vld [vmem:[%s378_s23 + $0x18] sm:$0xff]  ;;  %v402_v12 = vld [vmem:[%s1873_s0] sm:$0xff] }
  0x25   : > { %1407 = vmatprep.subr.bf16.mxu1 %v1406_v4  ;;  %v1402_v13 = vpack.c.bf16 %v407_v11, %v406_v10  ;;  %1359 = vmatprep.mubr.msk.f32.mxu1 %vm416_vm1, %v402_v12  ;;  %v403_v14 = vld [vmem:[%s1873_s0 + $0x8] sm:$0xff]  ;;  %v412_v20 = vld [vmem:[%s1731_s28] sm:$0xff]  ;;  %v414_v22 = vld [vmem:[%s1731_s28 + $0x10] sm:$0xff] }
  0x26   : > { %1409 = vmatpush3.bf16.msra.mxu1 %v1406_v4  ;;  %1399 = vmatprep.subr.bf16.mxu0 %v1398_v8  ;;  %v413_v21 = vld [vmem:[%s1731_s28 + $0x8] sm:$0xff]  ;;  %v415_v24 = vld [vmem:[%s1731_s28 + $0x18] sm:$0xff]  ;;  %v1295_v27 = vld [vmem:[%s1874_s1] ss:$0 sm:$0xff] }
  0x27   : > { %1401 = vmatpush3.bf16.msra.mxu0 %v1398_v8  ;;  %1411 = vmatprep.subr.bf16.mxu1 %v1410_v9  ;;  %v1414_v23 = vpack.c.bf16 %v413_v21, %v412_v20  ;;  %v1418_v25 = vpack.c.bf16 %v415_v24, %v414_v22  ;;  %v1296_v32 = vld [vmem:[%s1874_s1 + $0x1] ss:$0 sm:$0xff]  ;;  %v991_v61 = vld [vmem:[#allocation2 + $0x8] sm:$0xff] }
  0x28   : > { %1403 = vmatprep.subr.bf16.mxu0 %v1402_v13  ;;  %1348 = vmatprep.mubr.msk.f32.mxu0 %vm416_vm1, %v402_v12  ;;  %v989_v56 = vld [vmem:[%s1736_s16] sm:$0xff] }
  0x29   : > { %v990_v62 = vld [vmem:[#allocation2] sm:$0xff] }
  0x2a   : > { %1413 = vmatpush3.bf16.msra.mxu1 %v1410_v9 }
  0x2b   : > { %1405 = vmatpush3.bf16.msra.mxu0 %v1402_v13  ;;  %1373 = vmatprep.subr.mxu1 %v1609_v15 }
  0x2c   : > { %1415 = vmatprep.subr.bf16.mxu0 %v1414_v23 }
  0x2d   : > { %1360 = vmatmul.mubr.msk.f32.vlgmr.msra.gmra.mrb[0].mxu1 %vm416_vm1, %v403_v14 }
  0x2e   : > { %1349 = vmatmul.mubr.msk.f32.vlgmr.msra.gmra.mrb[0].mxu0 %vm416_vm1, %v403_v14  ;;  %1375 = vmatprep.mubr.msk.f32.mxu1 %vm1610_vm2, %v1609_v15 }
  0x2f   : > { %1370 = vmatprep.mubr.msk.f32.mxu0 %vm416_vm1, %v402_v12  ;;  %1417 = vmatpush3.bf16.msra.mxu0 %v1414_v23 }
  0x30   : > { %1419 = vmatprep.subr.bf16.mxu0 %v1418_v25 }
  0x33   : > { %1421 = vmatpush3.bf16.msra.mxu0 %v1418_v25 }
  0x34   : > { %1383 = vmatprep.subr.mxu0 %v1609_v15 }
  0x36   : > { %1371 = vmatmul.mubr.msk.f32.vlgmr.msra.gmra.mrb[2].mxu0 %vm416_vm1, %v403_v14 }
  0x37   : > { %1385 = vmatprep.mubr.msk.f32.mxu0 %vm1610_vm2, %v1609_v15 }
 0x100   : > { %v1361_v16 = vpop.f32.mrb[0].mxu1 }
 0x101   : > { %v564_v17 = vpop.f32.mrb[1].mxu1  ;;  %v1350_v18 = vpop.f32.mrb[0].mxu0 }
 0x102   : > { %1374 = vmatpush3.xpose.msk.msra.mxu1 %vm648_vm3, %v564_v17  ;;  %v489_v19 = vpop.f32.mrb[1].mxu0 }
 0x103   : > { %1378 = vmatprep.subr.mxu1 %v1609_v15 }
 0x105   : > { %1376 = vmatmul.mubr.msk.f32.vlgmr.msra.gmra.mrb[2].mxu1 %vm648_vm3, %v489_v19 }
 0x106   : > { %1379 = vmatpush3.xpose.msk.msra.mxu1 %vm648_vm3, %v1361_v16  ;;  %1380 = vmatprep.mubr.msk.f32.mxu1 %vm1610_vm2, %v1609_v15 }
 0x107   : > { %1388 = vmatprep.subr.mxu1 %v1609_v15 }
 0x109   : > { %1381 = vmatmul.mubr.msk.f32.vlgmr.msra.gmra.mrb[4].mxu1 %vm648_vm3, %v1350_v18  ;;  %v1372_v48 = vpop.f32.mrb[2].mxu0 }
 0x10a   : > { %1390 = vmatprep.mubr.msk.f32.mxu1 %vm1610_vm2, %v1609_v15  ;;  %v639_v49 = vpop.f32.mrb[3].mxu0  ;;  %1389 = vmatpush3.msra.mxu1 %v1372_v48 }
 0x10b   : > { %1384 = vmatpush3.msra.mxu0 %v639_v49 }
 0x10c   : > { %1393 = vmatprep.subr.mxu0 %v989_v56 }
 0x1d8   : > { %v721_v26 = vpop.f32.mrb[2].mxu1 }
 0x1d9   : > { %v801_v28 = vmul.f32 0.35355338, %v721_v26  ;;  %v1377_v29 = vpop.f32.mrb[3].mxu1 }
 0x1db   : > { %v817_v30 = vadd.f32 %v1295_v27, %v801_v28 }
 0x1dc   : > { %v797_v31 = vpop.f32.mrb[4].mxu1 }
 0x1dd   : > { %v802_v33 = vmul.f32 0.35355338, %v797_v31  ;;  %v1382_v34 = vpop.f32.mrb[5].mxu1  ;;  %v819_v35 = vsel %vm648_vm3, %v817_v30, -inf }
 0x1de   : > { %820 = vmax.xlane.f32.xlu0 %v819_v35 }
 0x1df   : > { %v818_v36 = vadd.f32 %v1296_v32, %v802_v33 }
 0x1e1   : > { %v822_v37 = vsel %vm648_vm3, %v818_v36, -inf }
 0x1e2   : > { %823 = vmax.xlane.f32.xlu0 %v822_v37 }
 0x26b   : > { %v821_v38 = vpop.xlane.xlu0 %820 }
 0x26c   : > { %v825_v39 = vsub.f32 %v817_v30, %v821_v38 }
 0x26e   : > { %v827_v40 = vmul.f32 1.442695, %v825_v39 }
 0x26f   : > { %v824_v41 = vpop.xlane.xlu0 %823 }
 0x270   : > { %1490 = vpow2.f32 %v827_v40  ;;  %v826_v42 = vsub.f32 %v818_v36, %v824_v41 }
 0x272   : > { %v829_v43 = vmul.f32 1.442695, %v826_v42 }
 0x274   : > { %1492 = vpow2.f32 %v829_v43 }
 0x27a   : > { %v1491_v44 = vpop.eup %1490 }
 0x27b   : > { %v831_v45 = vsel %vm648_vm3, %v1491_v44, 0.0 }
 0x27c   : > { %832 = vadd.xlane.f32.xlu1 %v831_v45 }
 0x27e   : > { %v1493_v46 = vpop.eup %1492 }
 0x27f   : > { %v834_v47 = vsel %vm648_vm3, %v1493_v46, 0.0 }
 0x280   : > { %835 = vadd.xlane.f32.xlu1 %v834_v47 }
 0x309   : > { %v833_v50 = vpop.xlane.xlu1 %832 }
 0x30a   : > { %1494 = vrcp.f32 %v833_v50 }
 0x30d   : > { %v836_v51 = vpop.xlane.xlu1 %835 }
 0x30e   : > { %1496 = vrcp.f32 %v836_v51 }
 0x314   : > { %v1495_v52 = vpop.eup %1494 }
 0x315   : > { %v839_v53 = vmul.f32 %v1495_v52, %v1491_v44 }
 0x317   : > { %841 = vst.msk [vmem:[%s1738_s14] sm:$0xff] %vm648_vm3, %v839_v53  ;;  %1386 = vmatmul.mubr.msk.f32.vlgmr.msra.gmra.mrb[4].mxu0 %vm648_vm3, %v839_v53 }
 0x318   : > { %v1497_v54 = vpop.eup %1496  ;;  %1394 = vmatpush3.msra.mxu0 %v989_v56 }
 0x319   : > { %v840_v55 = vmul.f32 %v1497_v54, %v1493_v46 }
 0x31b   : > { %842 = vst.msk [vmem:[%s1738_s14 + $0x8] sm:$0xff] %vm648_vm3, %v840_v55  ;;  %1391 = vmatmul.mubr.msk.f32.vlgmr.msra.gmra.mrb[6].mxu1 %vm648_vm3, %v840_v55 }
 0x3ea   : > { %v912_v57 = vpop.f32.mrb[4].mxu0 }
 0x3eb   : > { %v1387_v58 = vpop.f32.mrb[5].mxu0  ;;  %1395 = vmatprep.mubr.msk.f32.mxu0 %vm648_vm3, %v912_v57 }
 0x3ee   : > { %v985_v59 = vpop.f32.mrb[6].mxu1 }
 0x3ef   : > { %v1392_v60 = vpop.f32.mrb[7].mxu1  ;;  %1396 = vmatmul.mubr.msk.f32.vlgmr.msra.gmra.mrb[6].mxu0 %vm648_vm3, %v985_v59 }
 0x4c0   : > { %1080 = sbr.rel (%p1301_p13) target bundleno = 1233 (0x4d1), region = 52 }
 0x4c2   : > { %v1397_v63 = vpop.f32.mrb[6].mxu0 }
 0x4c3   : > { %v1074_v0 = vadd.f32 %v1397_v63, %v991_v61  ;;  %v1064_v1 = vpop.f32.mrb[7].mxu0 }
 0x4c4   : > { %v1073_v2 = vadd.f32 %v1064_v1, %v990_v62 }
 0x4c5   : > { %1076 = vst.msk [vmem:[#allocation2 + $0x8] sm:$0xff] %vm416_vm1, %v1074_v0 }
 0x4c6   : > { %1075 = vst.msk [vmem:[#allocation2] sm:$0xff] %vm416_vm1, %v1073_v2 }
 0x4cc   : > { %v1082_v4 = vld [vmem:[#allocation2 + $0x8] sm:$0xff] }
 0x4cd   : > { %v1081_v3 = vld [vmem:[#allocation2] sm:$0xff]  ;;  %v1084_v6 = vmax.f32 %v1082_v4, 0.0 }
 0x4ce   : > { %v1083_v5 = vmax.f32 %v1081_v3, 0.0 }
 0x4cf   : > { %1086 = vst.msk [vmem:[#allocation3 + $0x8] sm:$0xff] %vm416_vm1, %v1084_v6 }
 0x4d0   : > { %1085 = vst.msk [vmem:[#allocation3] sm:$0xff] %vm416_vm1, %v1083_v5 }
 0x4d1 PF: > { %s1611_s16 = smov [#allocation3]  }
 0x4d2   : > { %s1101_s21 = sshll.u32 %s1611_s16, 4  ;;  %s1102_s21 = int_to_ptr.vmem [resolvable:$true] %s1101_s21 }
 0x4d3   : > { %s1498_s22 = scalar_lea.vmem %s1102_s21, 256  ;;  %p1505_p5 = scmp.lt.s32.totalorder %s1102_s21, %s1102_s21 }
 0x4d4   : > { %p1499_p0 = scmp.ne.s32.totalorder %s1102_s21, %s1498_s22  ;;  %p1506_p6 = scmp.lt.s32.totalorder %s1498_s22, %s1498_s22 }
 0x4d6   : > { %p1500_p1 = pnand %p1499_p0, %p1692_p2  ;;  %p1507_p7 = por %p1506_p6, %p1505_p5 }
 0x4d8   : > { %p1501_p3 = pneg %p1500_p1 }
 0x4da   : > { %p1508_p9 = pnand %p1507_p7, %p1501_p3 }
 0x4dc   : > { %1511 = shalt.err (!%p1508_p9)
}
 0x4dd   : > { %s1512_s8 = scalar_lea.hbm %s1879_s6, 256 }
 0x4de   : > { %p1513_p10 = scmp.ne.s32.totalorder %s1879_s6, %s1512_s8  ;;  %p1518_p13 = scmp.lt.u32.totalorder %s1512_s8, %s1879_s6 }
 0x4e0   : > { %p1514_p11 = pnand %p1513_p10, %p1692_p2 }
 0x4e2   : > { %p1515_p12 = pneg %p1514_p11 }
 0x4e4   : > { %p1520_p0 = pnand %p1518_p13, %p1515_p12 }
 0x4e6   : > { %1523 = shalt.err (!%p1520_p0)
}
 0x4e7   : > { %s1612_s15 = smov 128   ;;  %s1613_s17 = smov 8  }
 0x4e8   : > { %1423 = dma.vmem_to_hbm [thread:$0]  (%p1692_p2), %s1102_s21, 256, %s1879_s6, [#allocation4], %s1612_s15, %s1612_s15, %s1613_s17  }
 0x4e9   : > { %s1304_s28 = sshll.u32 %s1598_s27, 7  ;;  %s1119_s23 = sshll.u32 %s1738_s14, 4  ;;  %s1817_s23 = int_to_ptr.vmem [resolvable:$true] %s1119_s23 }
 0x4ea   : > { %s1814_s22 = scalar_lea.hbm %s1880_s7, %s1304_s28  ;;  %s1894_s30 = sand.u32 1, %s1590_s25  }
 0x4eb   : > { %s1821_s8 = scalar_lea.sflag [#allocation6], %s1894_s30  ;;  %s1524_s10 = scalar_lea.vmem %s1817_s23, 256 }
 0x4ec   : > { %p1525_p1 = scmp.ne.s32.totalorder %s1817_s23, %s1524_s10  ;;  %s1614_s27 = smov [#allocation5]  }
 0x4ed   : > { %s1528_s21 = sshll.u32 %s1614_s27, 4  ;;  %s1529_s21 = int_to_ptr.vmem [resolvable:$false] %s1528_s21 }
 0x4ee   : > { %p1526_p3 = pnand %p1525_p1, %p1702_p4  ;;  %s1530_s13 = scalar_lea.vmem %s1529_s21, 512 }
 0x4ef   : > { %p1531_p6 = scmp.lt.s32.totalorder %s1817_s23, %s1529_s21  ;;  %p1532_p7 = scmp.lt.s32.totalorder %s1530_s13, %s1524_s10 }
 0x4f0   : > { %p1527_p5 = pneg %p1526_p3 }
 0x4f1   : > { %p1533_p9 = por %p1532_p7, %p1531_p6 }
 0x4f3   : > { %p1534_p10 = pnand %p1533_p9, %p1527_p5 }
 0x4f5   : > { %1537 = shalt.err (!%p1534_p10)
}
 0x4f6   : > { %s1538_s14 = scalar_lea.hbm %s1814_s22, 256  ;;  %s1542_s18 = scalar_lea.hbm %s1880_s7, 1024 }
 0x4f7   : > { %p1539_p11 = scmp.ne.s32.totalorder %s1814_s22, %s1538_s14  ;;  %p1543_p0 = scmp.lt.u32.totalorder %s1814_s22, %s1880_s7 }
 0x4f8   : > { %p1544_p1 = scmp.lt.u32.totalorder %s1542_s18, %s1538_s14  ;;  %p1546_p5 = scmp.lt.u32.totalorder %s1538_s14, %s1814_s22 }
 0x4f9   : > { %p1540_p12 = pnand %p1539_p11, %p1702_p4 }
 0x4fa   : > { %p1545_p3 = por %p1544_p1, %p1543_p0 }
 0x4fb   : > { %p1541_p13 = pneg %p1540_p12 }
 0x4fc   : > { %p1547_p6 = por %p1546_p5, %p1545_p3 }
 0x4fe   : > { %p1548_p7 = pnand %p1547_p6, %p1541_p13 }
 0x500   : > { %1551 = shalt.err (!%p1548_p7)
}
 0x501   : > { %s1615_s20 = smov 512  }
 0x502   : > { %1424 = dma.vmem_to_hbm [thread:$0]  (%p1702_p4), %s1817_s23, 256, %s1814_s22, %s1821_s8, %s1612_s15, %s1615_s20, %s1613_s17  }
 0x503   : > { %1577 = dma.done.wait (%p1692_p2), [#allocation4], 256  }
 0x504   : > { %1579 = vsyncadd (%p1692_p2), [#allocation4], 4294967040 }
 0x505 PF: > { %p1434_p9 = scmp.ge.s32.totalorder %s1606_s29, 2  ;;  %s1138_s30 = sand.u32 1, %s1586_s24  }
 0x506   : > { %s1139_s12 = scalar_lea.sflag [#allocation6], %s1138_s30 }
 0x507   : > { %p1429_p10 = pnand %p1434_p9, %p1709_p8 }
 0x509   : > { %1581 = dma.done.wait (!%p1429_p10), %s1139_s12, 256  }
 0x50a   : > { %1583 = vsyncadd (!%p1429_p10), %s1139_s12, 4294967040  ;;  %s22_s29 = sadd.s32 1, %s1606_s29   ;;  %s1896_s15 = sld [smem:[#allocation9_spill]] }
 0x50b   : > { %p19_p11 = scmp.ge.s32.totalorder %s22_s29, 6   ;;  %s1897_s26 = sld [smem:[#allocation13_spill]] }
 0x50c   : > { %s1898_s27 = sld [smem:[#allocation10_spill]]  ;;  %s1899_s28 = sld [smem:[#allocation11_spill]] }
 0x50d   : > { %s1900_s24 = smov %s1590_s25  ;;  %21 = sbr.rel (!%p19_p11) target bundleno = 5 (0x5), region = 112 }
 0x510   : > { %s1901_s25 = smov %s1896_s15 }
 0x514   :  { %1144 = vsyncpa [#allocation4], 1 }
 0x515   :  { %1146 = vsyncpa [#allocation4 + $0x1], 1 }
 0x516   :  { %1147 = vsyncpa [#allocation6], 1 }
 0x517   :  { %1149 = vsyncpa [#allocation6 + $0x1], 1 }

</bundles_post_ra>
